<compile_context>
chip_gen: v7x
topology: tpu7x:2x2x1
jax: 0.10.0
libtpu: 0.0.40
codegen_flags: <defaults>
</compile_context>

<pallas_src>
import math

import jax
import jax.numpy as jnp
from jax.experimental import pallas as pl
from jax.experimental.pallas import tpu as pltpu


def _round_up(x, m):
    return ((x + m - 1) // m) * m


# Sublane granularity that satisfies both f32 (8,128) and bf16 (16,128) tiling.
_SUBLANE = 16


def _device_config():
    """Per-generation tile sizing / VMEM budget with a conservative fallback."""
    kind = ""
    try:
        kind = jax.devices()[0].device_kind.lower()
    except Exception:
        pass
    if "v7" in kind or "7x" in kind:
        # 64 MiB physical VMEM, ~3.2 TB/s HBM, 2 TensorCores:
        # 4 MiB blocks under a ~48 MiB budget; try to expose >=2 parallel row tiles.
        return dict(max_cols=2048, max_row_tile=512, vmem_limit=48 << 20, multi_tile=True)
    if "v6" in kind or "trillium" in kind:
        # 128 MiB VMEM, ~1.4 TB/s HBM: 8 MiB blocks, raised scoped-VMEM limit.
        return dict(max_cols=4096, max_row_tile=512, vmem_limit=96 << 20, multi_tile=False)
    if "v5e" in kind or "v5 lite" in kind or "v5lite" in kind:
        # 128 MiB physical but only 16 MiB default scoped limit: raise it, 2 MiB blocks.
        return dict(max_cols=2048, max_row_tile=256, vmem_limit=64 << 20, multi_tile=False)
    # Unknown chip: 2 MiB blocks, leave the default scoped-VMEM limit untouched.
    return dict(max_cols=2048, max_row_tile=256, vmem_limit=None, multi_tile=False)


def _plan_layout(n, max_cols, max_row_tile, multi_tile):
    """Choose a lane-dense (rows, cols) layout.

    Prefers `cols` = multiple of 128 that divides n exactly (no host-side pad).
    Ragged last row tiles are allowed (Pallas masks the out-of-bounds part), so
    rows are never padded up to a multiple of the row tile.
    """
    n_pad = _round_up(n, 128)               # pad only if n is not lane-aligned
    cols = 128
    c = (min(max_cols, n_pad) // 128) * 128
    while c >= 128:
        if n_pad % c == 0:
            cols = c
            break
        c -= 128
    rows = n_pad // cols
    if rows <= max_row_tile:
        if multi_tile and rows >= 2 * _SUBLANE:
            # Dual-TensorCore chips (v7x): guarantee >=2 tiles on the parallel axis.
            row_tile = _round_up(pl.cdiv(rows, 2), _SUBLANE)
        else:
            row_tile = rows                  # full extent -> exempt from (8,128) rule
    else:
        row_tile = (max_row_tile // _SUBLANE) * _SUBLANE
    num_row_tiles = pl.cdiv(rows, row_tile)
    return n_pad, cols, rows, row_tile, num_row_tiles


def _if_node_kernel(v_threshold, v_reset):
    """Fused multi-timestep IF-neuron kernel with baked-in scalar params.

    Grid = (row_tiles, T).  v_ref (output) is block-resident across the T axis
    and acts as the running membrane-potential state.
    """
    vth = float(v_threshold)
    vrs = None if v_reset is None else float(v_reset)

    def kernel(dv_ref, v0_ref, spike_ref, v_ref):
        t = pl.program_id(1)

        @pl.when(t == 0)
        def _():
            v_ref[...] = v0_ref[...]

        v_new = v_ref[...] + dv_ref[...].astype(v_ref.dtype)   # integrate
        fired = v_new >= vth                                    # Heaviside fire
        spike_ref[...] = fired.astype(spike_ref.dtype)
        if vrs is None:                                         # soft reset
            v_ref[...] = jnp.where(fired, v_new - vth, v_new)
        else:                                                   # hard reset
            v_ref[...] = jnp.where(fired, jnp.asarray(vrs, dtype=v_new.dtype), v_new)

    return kernel


def if_node_forward_multistep(dv_seq, v_state, v_threshold=1.0, v_reset=0.0,
                              spike_dtype=jnp.bfloat16):
    """Run T IFNode steps in one fused kernel.

    dv_seq:  (T, *state_shape) float  -- per-step voltage increments
    v_state: (*state_shape)    float  -- initial membrane potential
    returns: (spikes, v_next) with spikes (T, *state_shape) in `spike_dtype`
             (values are exactly 0/1) and v_next (*state_shape) in v_state.dtype.
    """
    T = dv_seq.shape[0]
    state_shape = dv_seq.shape[1:]
    assert v_state.shape == state_shape, "v_state shape must match dv_seq[1:]"
    v_dtype = v_state.dtype
    spike_dtype = jnp.dtype(spike_dtype)

    cfg = _device_config()
    n = math.prod(state_shape)
    n_pad, cols, rows, row_tile, num_row_tiles = _plan_layout(
        n, cfg["max_cols"], cfg["max_row_tile"], cfg["multi_tile"])

    dv_flat = dv_seq.reshape(T, n)
    v_flat = v_state.reshape(n)
    if n_pad != n:
        # Fallback only when n is not a multiple of 128 (< 128 extra elements).
        dv_flat = jnp.pad(dv_flat, ((0, 0), (0, n_pad - n)))
        v_flat = jnp.pad(v_flat, (0, n_pad - n))
    dv3 = dv_flat.reshape(T, rows, cols)
    v2 = v_flat.reshape(rows, cols)

    kernel = _if_node_kernel(v_threshold, v_reset)

    dv_bytes = jnp.dtype(dv_seq.dtype).itemsize
    spike_bytes = spike_dtype.itemsize
    v_bytes = jnp.dtype(v_dtype).itemsize
    cost = pl.CostEstimate(
        flops=3 * T * n_pad,
        transcendentals=0,
        bytes_accessed=T * n_pad * (dv_bytes + spike_bytes) + 2 * n_pad * v_bytes,
    )

    cp_kwargs = dict(dimension_semantics=("parallel", "arbitrary"))
    if cfg["vmem_limit"] is not None:
        cp_kwargs["vmem_limit_bytes"] = cfg["vmem_limit"]

    spike3, v_next2 = pl.pallas_call(
        kernel,
        out_shape=(
            jax.ShapeDtypeStruct((T, rows, cols), spike_dtype),
            jax.ShapeDtypeStruct((rows, cols), v_dtype),
        ),
        grid=(num_row_tiles, T),
        in_specs=[
            # dv: streamed per (row_tile, t); leading T dim squeezed away.
            pl.BlockSpec((None, row_tile, cols), lambda r, t: (t, r, 0)),
            # v0: fetched once per row tile (block index independent of t).
            pl.BlockSpec((row_tile, cols), lambda r, t: (r, 0)),
        ],
        out_specs=(
            pl.BlockSpec((None, row_tile, cols), lambda r, t: (t, r, 0)),
            # v_next: resident accumulator across the T ("arbitrary") axis.
            pl.BlockSpec((row_tile, cols), lambda r, t: (r, 0)),
        ),
        compiler_params=pltpu.CompilerParams(**cp_kwargs),
        cost_estimate=cost,
    )(dv3, v2)

    spikes = spike3.reshape(T, n_pad)
    v_next = v_next2.reshape(n_pad)
    if n_pad != n:
        spikes = spikes[:, :n]
        v_next = v_next[:n]
    return spikes.reshape((T,) + state_shape), v_next.reshape(state_shape)


def if_node_forward(dv, v_state, v_threshold=1.0, v_reset=0.0, spike_dtype=jnp.bfloat16):
    """Single IFNode step (matches IFNode.forward), implemented as a T=1 fused call."""
    spikes, v_next = if_node_forward_multistep(
        dv[None], v_state, v_threshold, v_reset, spike_dtype)
    return spikes[0], v_next


def _reference_multistep(dv_seq, v0, v_threshold=1.0, v_reset=0.0):
    v = v0
    spikes = []
    for t in range(dv_seq.shape[0]):
        v = v + dv_seq[t]
        s = (v >= v_threshold).astype(jnp.float32)
        if v_reset is None:
            v = v - s * v_threshold
        else:
            v = s * v_reset + (1.0 - s) * v
        spikes.append(s)
    return jnp.stack(spikes), v


if __name__ == "__main__":
    key = jax.random.PRNGKey(0)
    T, B, C, H, W = 8, 2, 4, 16, 16

    # Deterministic inputs; scale so some neurons cross the threshold each step.
    dv_seq = jax.random.uniform(key, (T, B, C, H, W), dtype=jnp.float32) * 2.0
    v0 = jnp.zeros((B, C, H, W), dtype=jnp.float32)

    # --- fused multi-step path, hard reset (v_reset = 0.0) ---
    spikes, v_final = if_node_forward_multistep(dv_seq, v0, v_threshold=1.0, v_reset=0.0)
    spikes = jax.block_until_ready(spikes)
    v_final = jax.block_until_ready(v_final)
    spikes_ref, v_ref = _reference_multistep(dv_seq, v0, 1.0, 0.0)
    assert jnp.allclose(spikes.astype(jnp.float32), spikes_ref), "spike mismatch (hard reset)"
    assert jnp.allclose(v_final, v_ref), "voltage mismatch (hard reset)"

    # --- fused multi-step path, soft reset (v_reset = None) ---
    spikes_s, v_final_s = if_node_forward_multistep(dv_seq, v0, v_threshold=1.0, v_reset=None)
    spikes_s = jax.block_until_ready(spikes_s)
    v_final_s = jax.block_until_ready(v_final_s)
    spikes_s_ref, v_s_ref = _reference_multistep(dv_seq, v0, 1.0, None)
    assert jnp.allclose(spikes_s.astype(jnp.float32), spikes_s_ref), "spike mismatch (soft reset)"
    assert jnp.allclose(v_final_s, v_s_ref, atol=1e-6), "voltage mismatch (soft reset)"

    # --- single-step path (module's forward signature) ---
    spike1, v1 = if_node_forward(dv_seq[0], v0, v_threshold=1.0, v_reset=0.0)
    spike1 = jax.block_until_ready(spike1)
    v1 = jax.block_until_ready(v1)
    s1_ref, v1_ref = _reference_multistep(dv_seq[:1], v0, 1.0, 0.0)
    assert jnp.allclose(spike1.astype(jnp.float32), s1_ref[0]), "spike mismatch (single step)"
    assert jnp.allclose(v1, v1_ref), "voltage mismatch (single step)"

    print("KERNEL_OK")
</pallas_src>

<mosaic_0001>
module attributes {stable_mosaic.version = 11 : i64} {
  func.func @kernel(%arg0: i32, %arg1: i32, %arg2: memref<1x1x2048xf32, #tpu.memory_space<vmem>>, %arg3: memref<1x2048xf32, #tpu.memory_space<vmem>>, %arg4: memref<1x1x2048xbf16, #tpu.memory_space<vmem>>, %arg5: memref<1x2048xf32, #tpu.memory_space<vmem>>) attributes {dimension_semantics = [#tpu.dimension_semantics<parallel>, #tpu.dimension_semantics<arbitrary>], iteration_bounds = array<i64: 1, 8>, scalar_prefetch = 0 : i64, scratch_operands = 0 : i64, tpu.core_type = #tpu.core_type<tc>, window_params = [{transform_indices = @transform_0, window_bounds = array<i64: 1, 1, 2048>}, {transform_indices = @transform_1, window_bounds = array<i64: 1, 2048>}, {transform_indices = @transform_2, window_bounds = array<i64: 1, 1, 2048>}, {transform_indices = @transform_3, window_bounds = array<i64: 1, 2048>}]} {
    %c0_i32 = arith.constant 0 : i32
    %0 = arith.cmpi eq, %arg1, %c0_i32 : i32
    %1 = arith.extui %0 : i1 to i32
    %c0_i32_0 = arith.constant 0 : i32
    %2 = arith.cmpi ne, %1, %c0_i32_0 : i32
    scf.if %2 {
      %c0_11 = arith.constant 0 : index
      %c0_12 = arith.constant 0 : index
      %18 = vector.load %arg3[%c0_11, %c0_12] : memref<1x2048xf32, #tpu.memory_space<vmem>>, vector<1x2048xf32>
      %c0_13 = arith.constant 0 : index
      %c0_14 = arith.constant 0 : index
      %19 = vector.load %arg5[%c0_13, %c0_14] : memref<1x2048xf32, #tpu.memory_space<vmem>>, vector<1x2048xf32>
      tpu.vector_store %arg5[%c0_13, %c0_14], %18 {strides = array<i32>} : memref<1x2048xf32, #tpu.memory_space<vmem>>, vector<1x2048xf32>,
    } else {
    }
    %c0 = arith.constant 0 : index
    %c0_1 = arith.constant 0 : index
    %3 = vector.load %arg5[%c0, %c0_1] : memref<1x2048xf32, #tpu.memory_space<vmem>>, vector<1x2048xf32>
    %c0_2 = arith.constant 0 : index
    %c0_3 = arith.constant 0 : index
    %c0_4 = arith.constant 0 : index
    %4 = vector.load %arg2[%c0_2, %c0_3, %c0_4] : memref<1x1x2048xf32, #tpu.memory_space<vmem>>, vector<1x1x2048xf32>
    %5 = vector.shape_cast %4 : vector<1x1x2048xf32> to vector<1x2048xf32>
    %6 = arith.addf %3, %5 : vector<1x2048xf32>
    %cst = arith.constant 1.000000e+00 : f32
    %7 = vector.broadcast %cst : f32 to vector<1x2048xf32>
    %8 = arith.cmpf oge, %6, %7 : vector<1x2048xf32>
    %9 = arith.extui %8 : vector<1x2048xi1> to vector<1x2048xi32>
    %10 = arith.sitofp %9 : vector<1x2048xi32> to vector<1x2048xf32>
    %11 = arith.truncf %10 : vector<1x2048xf32> to vector<1x2048xbf16>
    %c0_5 = arith.constant 0 : index
    %c0_6 = arith.constant 0 : index
    %c0_7 = arith.constant 0 : index
    %12 = vector.load %arg4[%c0_5, %c0_6, %c0_7] : memref<1x1x2048xbf16, #tpu.memory_space<vmem>>, vector<1x1x2048xbf16>
    %13 = vector.shape_cast %12 : vector<1x1x2048xbf16> to vector<1x2048xbf16>
    %14 = vector.shape_cast %11 : vector<1x2048xbf16> to vector<1x1x2048xbf16>
    tpu.vector_store %arg4[%c0_5, %c0_6, %c0_7], %14 {strides = array<i32>} : memref<1x1x2048xbf16, #tpu.memory_space<vmem>>, vector<1x1x2048xbf16>,
    %cst_8 = arith.constant 0.000000e+00 : f32
    %15 = vector.broadcast %cst_8 : f32 to vector<1x2048xf32>
    %16 = arith.select %8, %15, %6 : vector<1x2048xi1>, vector<1x2048xf32>
    %c0_9 = arith.constant 0 : index
    %c0_10 = arith.constant 0 : index
    %17 = vector.load %arg5[%c0_9, %c0_10] : memref<1x2048xf32, #tpu.memory_space<vmem>>, vector<1x2048xf32>
    tpu.vector_store %arg5[%c0_9, %c0_10], %16 {strides = array<i32>} : memref<1x2048xf32, #tpu.memory_space<vmem>>, vector<1x2048xf32>,
    return
  }
  func.func @transform_0(%arg0: i32, %arg1: i32) -> (i32, i32, i32) {
    %c0_i32 = arith.constant 0 : i32
    %c0_i32_0 = arith.constant 0 : i32
    return %arg1, %arg0, %c0_i32 : i32, i32, i32
  }
  func.func @transform_1(%arg0: i32, %arg1: i32) -> (i32, i32) {
    %c0_i32 = arith.constant 0 : i32
    %c0_i32_0 = arith.constant 0 : i32
    return %arg0, %c0_i32 : i32, i32
  }
  func.func @transform_2(%arg0: i32, %arg1: i32) -> (i32, i32, i32) {
    %c0_i32 = arith.constant 0 : i32
    %c0_i32_0 = arith.constant 0 : i32
    return %arg1, %arg0, %c0_i32 : i32, i32, i32
  }
  func.func @transform_3(%arg0: i32, %arg1: i32) -> (i32, i32) {
    %c0_i32 = arith.constant 0 : i32
    %c0_i32_0 = arith.constant 0 : i32
    return %arg0, %c0_i32 : i32, i32
  }
}

</mosaic_0001>

<bundles_post_ra>
// kernel: tpu_custom_call.1
= control target key start
LH: loop header
LB: loop body
LE: loop exit
PB: predicated region body
PF: predicated region fallthrough
CT: control target
= control target key end

     0   :  { %9 = vsyncpa [#allocation3], 0  ;;  %s1197_s0 = inlined_call_operand.hbm [shape: f32[8,1,2048], index: 0, kind: input, shape index: {}]   ;;  %s1198_s1 = inlined_call_operand.hbm [shape: f32[1,2048], index: 1, kind: input, shape index: {}]   ;;  %s1199_s2 = inlined_call_operand.vmem [shape: bf16[8,1,2048], index: 2, kind: output, shape index: {0}]   ;;  %s1200_s3 = inlined_call_operand.hbm [shape: f32[1,2048], index: 3, kind: output, shape index: {1}]  }
   0x1   :  { %11 = vsyncpa [#allocation3 + $0x1], 0 }
   0x2   :  { %12 = vsyncpa [#allocation6], 0 }
   0x3   :  { %13 = vsyncpa [#allocation4], 0  ;;  %s918_s12 = smov 0   ;;  %s920_s13 = smov 0  }
   0x4   :  { %s922_s14 = smov 0   ;;  %s924_s15 = smov 0  }
   0x5   :  { %s926_s16 = smov 0   ;;  %s928_s17 = smov 0  }
   0x6 LB: > { %s646_s18 = sadd.s32 4294967295, %s891_s17   ;;  %p53_p0 = scmp.ne.s32.totalorder %s875_s13, %s871_s12  ;;  %s891_s17 = sphi %s928_s17, %s19_s17   ;;  %s887_s16 = sphi %s926_s16, %s1234_s16   ;;  %s883_s15 = sphi %s924_s15, %s1233_s15   ;;  %s879_s14 = sphi %s922_s14, %s1232_s14   ;;  %s875_s13 = sphi %s920_s13, %s1231_s13   ;;  %s871_s12 = sphi %s918_s12, %s1230_s12  }
   0x7   : > { %p950_p1 = scmp.eq.s32.totalorder %s646_s18, 0  ;;  %p648_p2 = scmp.ge.s32.totalorder %s891_s17, 1 }
   0x8   : > { %p144_p3 = scmp.lt.s32.totalorder %s891_s17, 9  ;;  %s893_s22 = smov [#allocation5]  }
   0x9   : > { %s1205_s19 = scalar_select %p950_p1, 1, 0 }
   0xa   : > { %p958_p4 = por %p950_p1, %p53_p0  ;;  %p962_p5 = pnand %p648_p2, %p144_p3 }
   0xb   : > { %s160_s23 = sshll.u32 %s893_s22, 4  ;;  %s28_s25 = sadd.s32 1, %s887_s16  ;;  %s161_s23 = int_to_ptr.vmem [resolvable:$true] %s160_s23 }
   0xc   : > { %s1206_s20 = scalar_select %p958_p4, 1, 0 }
   0xd   : > { %s1207_s21 = scalar_select %p962_p5, 1, 0 }
   0xe   : > { %p684_p6 = pneg %p962_p5  ;;  %s40_s26 = sadd.s32 1, %s879_s14 }
   0xf   : > { %p976_p8 = scmp.ge.s32.totalorder %s28_s25, 8  ;;  %s749_s30 = scalar_lea.hbm %s1198_s1, 256 }
  0x10   : > { %p970_p7 = pnand %p684_p6, %p950_p1  ;;  %p750_p9 = scmp.ne.s32.totalorder %s1198_s1, %s749_s30 }
  0x11   : > { %s1209_s27 = scalar_select %p976_p8, 1, 0 }
  0x12   : > { %p751_p10 = pneg %p970_p7  ;;  %p756_p13 = scmp.lt.u32.totalorder %s749_s30, %s1198_s1 }
  0x14   : > { %p752_p11 = pnand %p751_p10, %p750_p9 }
  0x16   : > { %p753_p12 = pneg %p752_p11 }
  0x18   : > { %p758_p0 = pnand %p756_p13, %p753_p12 }
  0x1a   : > { %761 = shalt.err (!%p758_p0)
}
  0x1b   : > { %s762_s8 = scalar_lea.vmem %s161_s23, 256  ;;  %p770_p1 = scmp.lt.s32.totalorder %s161_s23, %s161_s23 }
  0x1c   : > { %p763_p2 = scmp.ne.s32.totalorder %s161_s23, %s762_s8  ;;  %p771_p4 = scmp.lt.s32.totalorder %s762_s8, %s762_s8 }
  0x1e   : > { %p765_p3 = pnand %p763_p2, %p751_p10  ;;  %p772_p5 = por %p771_p4, %p770_p1 }
  0x20   : > { %p766_p6 = pneg %p765_p3 }
  0x22   : > { %p773_p8 = pnand %p772_p5, %p766_p6 }
  0x24   : > { %776 = shalt.err (!%p773_p8)
}
  0x25   : > { %687 = dma.hbm_to_vmem [thread:$0]  (!%p970_p7), %s1198_s1, 256, %s161_s23, [#allocation6]  }
  0x26   : > { %p1210_p9 = scmp.ne.s32.totalorder %s1209_s27, 0  ;;  %p47_p1 = scmp.ne.s32.totalorder %s879_s14, %s875_s13 }
  0x27   : > { %p48_p4 = scmp.eq.s32.totalorder %s891_s17, 0  ;;  %p693_p5 = scmp.lt.s32.totalorder %s891_s17, 8 }
  0x28   : > { %s1236_s25 = smov (%p1210_p9, %s28_s25), 0  ;;  %s171_s12 = sand.u32 1, %s879_s14  }
  0x29   : > { %s35_s11 = ssub.s32 %s887_s16, %s1236_s25  ;;  %p49_p10 = por %p48_p4, %p47_p1 }
  0x2a   : > { %p38_p8 = scmp.eq.s32.totalorder %s35_s11, 0  ;;  %s673_s22 = sshll.u32 %s887_s16, 8 }
  0x2b   : > { %s651_s28 = sshll.u32 %s171_s12, 4  ;;  %s1016_s23 = scalar_lea.hbm %s1197_s0, %s673_s22 }
  0x2c   : > { %s1011_s24 = scalar_select %p38_p8, %s879_s14, %s40_s26  }
  0x2d   : > { %s175_s27 = scalar_lea.vmem [#allocation2], %s651_s28  ;;  %p1018_p7 = pnand %p693_p5, %p49_p10 }
  0x2e   : > { %s185_s4 = sshll.u32 %s175_s27, 4  ;;  %s172_s26 = scalar_lea.sflag [#allocation3], %s171_s12  ;;  %s1022_s4 = int_to_ptr.vmem [resolvable:$true] %s185_s4 }
  0x2f   : > { %s777_s6 = scalar_lea.hbm %s1016_s23, 256  ;;  %p779_p12 = pneg %p1018_p7 }
  0x30   : > { %p778_p11 = scmp.ne.s32.totalorder %s1016_s23, %s777_s6  ;;  %s782_s9 = scalar_lea.hbm %s1197_s0, 2048 }
  0x31   : > { %p783_p2 = scmp.lt.u32.totalorder %s1016_s23, %s1197_s0  ;;  %p784_p3 = scmp.lt.u32.totalorder %s782_s9, %s777_s6 }
  0x32   : > { %p780_p13 = pnand %p779_p12, %p778_p11  ;;  %p786_p9 = scmp.lt.u32.totalorder %s777_s6, %s1016_s23 }
  0x33   : > { %p785_p6 = por %p784_p3, %p783_p2 }
  0x34   : > { %p781_p0 = pneg %p780_p13 }
  0x35   : > { %p787_p1 = por %p786_p9, %p785_p6 }
  0x37   : > { %p788_p4 = pnand %p787_p1, %p781_p0 }
  0x39   : > { %791 = shalt.err (!%p788_p4)
}
  0x3a   : > { %s792_s12 = scalar_lea.vmem %s1022_s4, 256  ;;  %s894_s22 = smov [#allocation2]  }
  0x3b   : > { %p793_p5 = scmp.ne.s32.totalorder %s1022_s4, %s792_s12  ;;  %s797_s28 = sshll.u32 %s894_s22, 4  ;;  %s798_s28 = int_to_ptr.vmem [resolvable:$false] %s797_s28 }
  0x3c   : > { %s799_s29 = scalar_lea.vmem %s798_s28, 512  ;;  %p800_p11 = scmp.lt.s32.totalorder %s1022_s4, %s798_s28 }
  0x3d   : > { %p795_p8 = pnand %p793_p5, %p779_p12  ;;  %p801_p13 = scmp.lt.s32.totalorder %s799_s29, %s792_s12 }
  0x3f   : > { %p796_p10 = pneg %p795_p8  ;;  %p802_p2 = por %p801_p13, %p800_p11 }
  0x41   : > { %p803_p3 = pnand %p802_p2, %p796_p10 }
  0x43   : > { %806 = shalt.err (!%p803_p3)
}
  0x44   : > { %691 = dma.hbm_to_vmem [thread:$0]  (!%p1018_p7), %s1016_s23, 256, %s1022_s4, %s172_s26  }
  0x45   : > { %p1212_p0 = scmp.ne.s32.totalorder %s1207_s21, 0 }
  0x46   : > { %s196_s30 = sand.u32 (!%p1212_p0), 1, %s875_s13   ;;  %p1213_p12 = scmp.ne.s32.totalorder (!%p1212_p0), %s1206_s20, 0 }
  0x47   : > { %194 = sbr.rel (%p1212_p0) target bundleno = 140 (0x8c), region = 28  ;;  %s655_s27 = sshll.u32 (!%p1212_p0), %s196_s30, 4 }
  0x48   : > { %s197_s6 = scalar_lea.sflag (!%p1212_p0), [#allocation3], %s196_s30  ;;  %s200_s7 = scalar_lea.vmem (!%p1212_p0), [#allocation2], %s655_s27 }
  0x4e   : > { %858 = dma.done.wait (%p1213_p12), %s197_s6, 256  }
  0x4f   : > { %860 = vsyncadd (%p1213_p12), %s197_s6, 4294967040  ;;  %p1214_p6 = scmp.ne.s32.totalorder %s1205_s19, 0 }
  0x51   : > { %862 = dma.done.wait (%p1214_p6), [#allocation6], 256  }
  0x52   : > { %864 = vsyncadd (%p1214_p6), [#allocation6], 4294967040  ;;  %p230_p7 = scmp.lt.s32.totalorder %s883_s15, 7  ;;  %p658_p9 = scmp.ne.s32.totalorder %s883_s15, 0 }
  0x53   : > { %v242_v0 = vld [vmem:[#allocation5] sm:$0xff] (!%p658_p9)  ;;  %v243_v1 = vld [vmem:[#allocation5 + $0x8] sm:$0xff] (!%p658_p9) }
  0x54   : > { %s231_s21 = scalar_select %p230_p7, %s883_s15, 7 }
  0x55   : > { %241 = sbr.rel (%p658_p9) target bundleno = 92 (0x5c), region = 40  ;;  %244 = vst [vmem:[#allocation7] sm:$0xff] (!%p658_p9), %v242_v0  ;;  %245 = vst [vmem:[#allocation7 + $0x8] sm:$0xff] (!%p658_p9), %v243_v1 }
  0x56   : > { %s657_s23 = sshll.u32 %s231_s21, 4 }
  0x57   : > { %s1065_s26 = scalar_lea.vmem %s1199_s2, %s657_s23 }
  0x5c PF: > { %v246_v2 = vld [vmem:[#allocation7] sm:$0xff]  ;;  %v247_v4 = vld [vmem:[#allocation7 + $0x8] sm:$0xff]  ;;  %v260_v5 = vlaneseq  ;;  %v895_v8 = vmov 1966171168   ;;  %vm472_vm0 = vcmask 1040384   ;;  %vm475_vm3 = vcmask 1041409  }
  0x5d   : > { %v248_v3 = vld [vmem:[%s200_s7] sm:$0xff]  ;;  %v249_v7 = vld [vmem:[%s200_s7 + $0x8] sm:$0xff]  ;;  %v377_v9 = vunpack.c.l.s4 %v895_v8  ;;  %vm473_vm1 = vsmask.f32 256  ;;  %vm476_vm4 = vsmask.f32 1280 }
  0x5e   : > { %v250_v6 = vadd.f32 %v248_v3, %v246_v2  ;;  %v251_v10 = vadd.f32 %v249_v7, %v247_v4  ;;  %v1068_v11 = vshrl.u32 %v260_v5, 7  ;;  %vm1070_vm2 = vmand %vm472_vm0, %vm473_vm1  ;;  %vm479_vm7 = vcmask 1042434   ;;  %p1080_p1 = scmp.eq.s32.totalorder %s646_s18, 7  ;;  %s897_s19 = smov [#allocation7]  }
  0x5f   : > { %v378_v13 = vunpack.c.0.s8 %v377_v9  ;;  %vm1074_vm6 = vmand %vm475_vm3, %vm476_vm4  ;;  %vm480_vm8 = vsmask.f32 2304  ;;  %v896_v15 = vmov 0.0   ;;  %s534_s20 = sshll.u32 %s897_s19, 4  ;;  %s535_s20 = int_to_ptr.vmem [resolvable:$true] %s534_s20 }
  0x60   : > { %vm252_vm5 = vcmp.ge.f32.partialorder %v250_v6, 1.0  ;;  %vm253_vm9 = vcmp.ge.f32.partialorder %v251_v10, 1.0  ;;  %v262_v18 = vsub.s32 0, %v1068_v11  ;;  %v266_v21 = vsub.s32 1, %v1068_v11  ;;  %vm478_vm10 = vmor %vm1074_vm6, %vm1070_vm2  ;;  %s807_s18 = scalar_lea.vmem %s535_s20, 256  ;;  %p814_p10 = scmp.lt.s32.totalorder %s535_s20, %s535_s20 }
  0x61   : > { %v659_v16 = vsel %vm252_vm5, 1.0, %v896_v15  ;;  %v509_v17 = vsel %vm252_vm5, 0.0, %v250_v6  ;;  %v1085_v19 = vsel %vm253_vm9, 1.0, %v896_v15  ;;  %v510_v20 = vsel %vm253_vm9, 0.0, %v251_v10  ;;  %vm1100_vm11 = vmand %vm479_vm7, %vm480_vm8  ;;  %p808_p4 = scmp.ne.s32.totalorder %s535_s20, %s807_s18  ;;  %p815_p11 = scmp.lt.s32.totalorder %s807_s18, %s807_s18 }
  0x62   : > { %511 = vst [vmem:[#allocation7] sm:$0xff] %v509_v17  ;;  %v270_v22 = vsub.s32 2, %v1068_v11  ;;  %512 = vst [vmem:[#allocation7 + $0x8] sm:$0xff] %v510_v20  ;;  %v263_v23 = vrot.slane %v659_v16, %v262_v18  ;;  %v274_v24 = vsub.s32 3, %v1068_v11  ;;  %v278_v25 = vsub.s32 4, %v1068_v11 }
  0x63   : > { %v282_v26 = vsub.s32 5, %v1068_v11  ;;  %v267_v28 = vrot.slane %v659_v16, %v266_v21  ;;  %v286_v30 = vsub.s32 6, %v1068_v11  ;;  %v290_v31 = vsub.s32 7, %v1068_v11  ;;  %p809_p5 = pnand %p808_p4, %p1080_p1  ;;  %p816_p13 = por %p815_p11, %p814_p10 }
  0x64   : > { %v271_v29 = vrot.slane %v659_v16, %v270_v22 }
  0x65   : > { %p810_p8 = pneg %p809_p5 }
  0x67   : > { %p817_p2 = pnand %p816_p13, %p810_p8 }
  0x69   : > { %820 = shalt.err (!%p817_p2)
}
  0x6a   : > { %s821_s10 = scalar_lea.hbm %s1200_s3, 256 }
  0x6b   : > { %p822_p3 = scmp.ne.s32.totalorder %s1200_s3, %s821_s10  ;;  %p827_p6 = scmp.lt.u32.totalorder %s821_s10, %s1200_s3 }
  0x6d   : > { %p823_p0 = pnand %p822_p3, %p1080_p1 }
  0x6f   : > { %p824_p12 = pneg %p823_p0 }
  0x71   : > { %p829_p7 = pnand %p827_p6, %p824_p12 }
  0x73   : > { %832 = shalt.err (!%p829_p7)
}
  0x74   : > { %681 = dma.vmem_to_hbm [thread:$0]  (%p1080_p1), %s535_s20, 256, %s1200_s3, [#allocation4]   ;;  %v275_v32 = vrot.slane %v659_v16, %v274_v24  ;;  %v279_v33 = vrot.slane %v659_v16, %v278_v25  ;;  %v283_v34 = vrot.slane %v659_v16, %v282_v26  ;;  %v381_v35 = vsub.s32 %v378_v13, %v1068_v11  ;;  %vm1132_vm12 = vmor %vm1100_vm11, %vm478_vm10  ;;  %v503_v1 = vld [vmem:[%s1065_s26] sm:$0xff]  ;;  %v506_v13 = vld [vmem:[%s1065_s26 + $0x8] sm:$0xff] }
  0x75   : > { %v287_v36 = vrot.slane %v659_v16, %v286_v30  ;;  %v291_v37 = vrot.slane %v659_v16, %v290_v31  ;;  %v661_v38 = vpack.c.bf16 %v267_v28, %v263_v23  ;;  %vm483_vm13 = vcmask 1043459  }
  0x76   : > { %v662_v40 = vpack.c.bf16 %v275_v32, %v271_v29  ;;  %v663_v41 = vpack.c.bf16 %v283_v34, %v279_v33  ;;  %vm484_vm14 = vsmask.f32 3328  ;;  %vm487_vm15 = vcmask 1044484  }
  0x77   : > { %v664_v42 = vpack.c.bf16 %v291_v37, %v287_v36  ;;  %v382_v43 = vrot.slane %v661_v38, %v381_v35  ;;  %vm1136_vm0 = vmand %vm483_vm13, %vm484_vm14  ;;  %vm488_vm1 = vsmask.f32 4352  ;;  %vm491_vm3 = vcmask 1045509  }
  0x78   : > { %v389_v45 = vrot.slane %v662_v40, %v381_v35  ;;  %v396_v46 = vrot.slane %v663_v41, %v381_v35  ;;  %vm486_vm2 = vmor %vm1136_vm0, %vm1132_vm12  ;;  %vm492_vm4 = vsmask.f32 5376  ;;  %vm495_vm5 = vcmask 1046534  }
  0x79   : > { %v403_v47 = vrot.slane %v664_v42, %v381_v35  ;;  %vm489_vm6 = vmand %vm487_vm15, %vm488_vm1  ;;  %vm496_vm7 = vsmask.f32 6400  ;;  %vm499_vm8 = vcmask 1047559   ;;  %vm500_vm9 = vsmask.f32 7424 }
  0x7a   : > { %v404_v48 = vcombine.low %v382_v43, %v389_v45  ;;  %vm1144_vm10 = vmor %vm489_vm6, %vm486_vm2  ;;  %v295_v50 = vrot.slane %v1085_v19, %v262_v18  ;;  %v299_v51 = vrot.slane %v1085_v19, %v266_v21  ;;  %v303_v52 = vrot.slane %v1085_v19, %v270_v22 }
  0x7b   : > { %v405_v53 = vcombine.low %v396_v46, %v403_v47  ;;  %vm493_vm11 = vmand %vm491_vm3, %vm492_vm4  ;;  %v307_v54 = vrot.slane %v1085_v19, %v274_v24  ;;  %v311_v55 = vrot.slane %v1085_v19, %v278_v25  ;;  %v315_v56 = vrot.slane %v1085_v19, %v282_v26 }
  0x7c   : > { %v412_v57 = vrot.slane %v404_v48, %v381_v35  ;;  %vm494_vm12 = vmor %vm493_vm11, %vm1144_vm10  ;;  %v319_v58 = vrot.slane %v1085_v19, %v286_v30  ;;  %v323_v59 = vrot.slane %v1085_v19, %v290_v31  ;;  %v665_v60 = vpack.c.bf16 %v299_v51, %v295_v50 }
  0x7d   : > { %v419_v61 = vrot.slane %v405_v53, %v381_v35  ;;  %vm497_vm13 = vmand %vm495_vm5, %vm496_vm7  ;;  %v666_v62 = vpack.c.bf16 %v307_v54, %v303_v52  ;;  %v667_v63 = vpack.c.bf16 %v315_v56, %v311_v55 }
  0x7e   : > { %vm1163_vm14 = vmor %vm497_vm13, %vm494_vm12  ;;  %v668_v2 = vpack.c.bf16 %v323_v59, %v319_v58  ;;  %v431_v3 = vrot.slane %v665_v60, %v381_v35 }
  0x7f   : > { %v420_v4 = vcombine.low %v412_v57, %v419_v61  ;;  %vm501_vm15 = vmand %vm499_vm8, %vm500_vm9  ;;  %v438_v5 = vrot.slane %v666_v62, %v381_v35  ;;  %v445_v6 = vrot.slane %v667_v63, %v381_v35 }
  0x80   : > { %vm502_vm0 = vmor %vm501_vm15, %vm1163_vm14  ;;  %v452_v7 = vrot.slane %v668_v2, %v381_v35 }
  0x81   : > { %v504_v8 = vsel %vm502_vm0, %v420_v4, %v503_v1  ;;  %v453_v9 = vcombine.low %v431_v3, %v438_v5 }
  0x82   : > { %505 = vst [vmem:[%s1065_s26] sm:$0xff] %v504_v8  ;;  %v454_v10 = vcombine.low %v445_v6, %v452_v7 }
  0x83   : > { %v461_v11 = vrot.slane %v453_v9, %v381_v35 }
  0x84   : > { %v468_v12 = vrot.slane %v454_v10, %v381_v35 }
  0x86   : > { %v469_v14 = vcombine.low %v461_v11, %v468_v12 }
  0x88   : > { %v507_v15 = vsel %vm502_vm0, %v469_v14, %v506_v13 }
  0x89   : > { %508 = vst [vmem:[%s1065_s26 + $0x8] sm:$0xff] %v507_v15 }
  0x8a   : > { %866 = dma.done.wait (%p1080_p1), [#allocation4], 256  }
  0x8b   : > { %868 = vsyncadd (%p1080_p1), [#allocation4], 4294967040 }
  0x8c PF: > { %s19_s17 = sadd.s32 1, %s891_s17   ;;  %s1230_s12 = smov %s875_s13 }
  0x8d   : > { %p16_p9 = scmp.ge.s32.totalorder %s19_s17, 10   ;;  %s1231_s13 = smov %s879_s14 }
  0x8e   : > { %s1232_s14 = smov %s1011_s24  ;;  %s1233_s15 = smov %s887_s16 }
  0x8f   : > { %s1234_s16 = smov %s1236_s25  ;;  %18 = sbr.rel (!%p16_p9) target bundleno = 6 (0x6), region = 87 }
  0x96   :  { %558 = vsyncpa [#allocation3], 1 }
  0x97   :  { %560 = vsyncpa [#allocation3 + $0x1], 1 }
  0x98   :  { %561 = vsyncpa [#allocation6], 1 }
  0x99   :  { %562 = vsyncpa [#allocation4], 1 }
  0x9a   :  { %564 = vsyncpa [#allocation4 + $0x1], 1 }

</bundles_post_ra>
